<compile_context>
chip_gen: v7x
topology: tpu7x:2x2x1
jax: 0.10.0
libtpu: 0.0.40
codegen_flags: <defaults>
</compile_context>

<pallas_src>
import math
from functools import partial

import jax
import jax.numpy as jnp
from jax.experimental import pallas as pl
from jax.experimental.pallas import tpu as pltpu

_VMEM_LIMIT = 64 * 1024 * 1024  # explicit scoped-VMEM limit (fits v7x physical)


# ----------------------------- conv path ------------------------------------

def _conv_kernel(xa_ref, xh_ref, w01_ref, w2_ref, b_ref, o_ref):
    # xa_ref : (1, tr, 2, Wo+1, 2C)  row-pairs [i*tr, (i+1)*tr)
    # xh_ref : (1, 1, 1, Wo+1, 2C)   halo row-pair (i+1)*tr (even row of next pair)
    # w01_ref: (3, 2C, Cout)   stacked weights for kw=0 and kw=1, per kh
    # w2_ref : (3,  C, Cout)   weights for kw=2, per kh
    # b_ref  : (1, Cout)
    # o_ref  : (1, tr*Wo, Cout)
    tr = xa_ref.shape[1]
    wo1 = xa_ref.shape[3]
    two_c = xa_ref.shape[4]
    c = two_c // 2
    wo = wo1 - 1
    cout = o_ref.shape[2]

    a = xa_ref[0]                          # (tr, 2, Wo+1, 2C)
    halo = xh_ref[0, 0, 0]                 # (Wo+1, 2C)
    rows0 = a[:, 0]                        # input rows 2*oh      (kh = 0)
    rows1 = a[:, 1]                        # input rows 2*oh + 1  (kh = 1)
    if tr > 1:                             # input rows 2*oh + 2  (kh = 2)
        rows2 = jnp.concatenate([a[1:, 0], halo[None]], axis=0)
    else:
        rows2 = halo[None]

    acc = jnp.zeros((tr * wo, cout), jnp.float32)
    for kh, rows in enumerate((rows0, rows1, rows2)):
        # kw = 0,1 handled by one matmul against the stacked (2C, Cout) weight
        lhs01 = rows[:, :wo, :].reshape(tr * wo, two_c)
        acc = acc + jnp.dot(lhs01, w01_ref[kh],
                            preferred_element_type=jnp.float32)
        # kw = 2: even-parity lanes of the next column pair
        lhs2 = rows[:, 1:, :c].reshape(tr * wo, c)
        acc = acc + jnp.dot(lhs2, w2_ref[kh],
                            preferred_element_type=jnp.float32)
    o_ref[0] = (acc + b_ref[...]).astype(o_ref.dtype)


def _conv_block_rows(ho, wo, cin, itemsize, block_rows=None,
                     target_block_bytes=4 << 20):
    """Output rows per grid step.

    ~4 MiB input block, matmul M >= 512 rows, accumulator bounded; when more
    than one block is needed, the block is rounded so tr*Wo is a multiple of 8
    (sublane-aligned output block).
    """
    if block_rows is not None:
        tr = min(int(block_rows), ho)
    else:
        bytes_per_pair_row = 2 * (wo + 1) * 2 * cin * itemsize
        tr = max(1, target_block_bytes // bytes_per_pair_row)
        tr = max(tr, pl.cdiv(512, wo))       # keep matmul M dim >= 512
        tr = min(tr, max(1, 4096 // wo))     # bound f32 accumulator / out block
        tr = min(tr, ho)
    if tr >= ho:
        return int(ho)
    need = 8 // math.gcd(wo, 8)              # smallest tr with tr*wo % 8 == 0
    tr = (tr // need) * need
    if tr <= 0:
        tr = ho                              # cannot align -> single block
    return int(tr)


@partial(jax.jit, static_argnames=("block_rows",))
def conv_downsample(x_nchw, weight, bias, *, block_rows=None):
    """pad(right/bottom by 1) then Conv2d(C, C, kernel=3, stride=2, pad=0)."""
    B, Cin, H, W = x_nchw.shape
    Cout = weight.shape[0]
    Ho, Wo = H // 2, W // 2

    tr = _conv_block_rows(Ho, Wo, Cin, x_nchw.dtype.itemsize, block_rows)
    nb = pl.cdiv(Ho, tr)
    h_pairs = nb * tr + 1                  # row pairs incl. halo of last block
    Hp, Wp = 2 * h_pairs, 2 * (Wo + 1)     # generous zero pad (>= PyTorch's +1)

    x = jnp.transpose(x_nchw, (0, 2, 3, 1))                        # -> NHWC
    x = jnp.pad(x, ((0, 0), (0, Hp - H), (0, Wp - W), (0, 0)))
    xr = x.reshape(B, h_pairs, 2, Wo + 1, 2 * Cin)                 # free reshape

    # (Cout, Cin, kh, kw) -> (kh, kw, Cin, Cout); stack kw=0,1 along K.
    wt = jnp.transpose(weight, (2, 3, 1, 0)).astype(x.dtype)       # (3,3,Cin,Cout)
    w01 = jnp.concatenate([wt[:, 0], wt[:, 1]], axis=1)            # (3, 2Cin, Cout)
    w2 = wt[:, 2]                                                  # (3,  Cin, Cout)
    b_mat = bias.reshape(1, Cout).astype(jnp.float32)

    m, k = B * Ho * Wo, 9 * Cin
    itemsize = x.dtype.itemsize
    cost = pl.CostEstimate(
        flops=int(2 * m * k * Cout),
        transcendentals=0,
        bytes_accessed=int((xr.size + w01.size + w2.size) * itemsize
                           + b_mat.size * 4 + m * Cout * itemsize))

    out = pl.pallas_call(
        _conv_kernel,
        out_shape=jax.ShapeDtypeStruct((B, Ho * Wo, Cout), x_nchw.dtype),
        grid_spec=pltpu.PrefetchScalarGridSpec(
            num_scalar_prefetch=0,
            grid=(B, nb),
            in_specs=[
                pl.BlockSpec((1, tr, 2, Wo + 1, 2 * Cin),
                             lambda b, i: (b, i, 0, 0, 0)),
                pl.BlockSpec((1, 1, 1, Wo + 1, 2 * Cin),
                             lambda b, i: (b, (i + 1) * tr, 0, 0, 0)),
                pl.BlockSpec((3, 2 * Cin, Cout), lambda b, i: (0, 0, 0)),
                pl.BlockSpec((3, Cin, Cout), lambda b, i: (0, 0, 0)),
                pl.BlockSpec((1, Cout), lambda b, i: (0, 0)),
            ],
            out_specs=pl.BlockSpec((1, tr * Wo, Cout), lambda b, i: (b, i, 0)),
        ),
        compiler_params=pltpu.CompilerParams(
            dimension_semantics=("parallel", "parallel"),
            vmem_limit_bytes=_VMEM_LIMIT),
        cost_estimate=cost,
    )(xr, xr, w01, w2, b_mat)

    return jnp.transpose(out.reshape(B, Ho, Wo, Cout), (0, 3, 1, 2))  # -> NCHW


# --------------------------- avg-pool path ----------------------------------

def _avgpool_kernel(x_ref, o_ref):
    # x_ref: (tm, 2, Wo, 2C), o_ref: (tm, Wo, C)
    c = o_ref.shape[-1]
    blk = x_ref[...].astype(jnp.float32)
    s = (blk[:, 0, :, :c] + blk[:, 0, :, c:]
         + blk[:, 1, :, :c] + blk[:, 1, :, c:])
    o_ref[...] = (s * 0.25).astype(o_ref.dtype)


@jax.jit
def avgpool_downsample(x_nchw):
    """avg_pool2d(kernel=2, stride=2)."""
    B, C, H, W = x_nchw.shape
    Ho, Wo = H // 2, W // 2

    x = jnp.transpose(x_nchw, (0, 2, 3, 1))[:, :2 * Ho, :2 * Wo, :]  # NHWC, even crop
    xr = x.reshape(B * Ho, 2, Wo, 2 * C)                             # free reshape

    rows = B * Ho
    bytes_per_row = 2 * Wo * 2 * C * x.dtype.itemsize
    tm = max(1, (8 << 20) // bytes_per_row)             # ~8 MiB input blocks (mem-bound)
    tm = min(tm, max(8, pl.cdiv(rows, 2)))              # >=2 grid steps (v7x 2 TCs)
    tm = min(tm, rows)
    grid = (pl.cdiv(rows, tm),)

    cost = pl.CostEstimate(
        flops=int(4 * rows * Wo * C),
        transcendentals=0,
        bytes_accessed=int((xr.size + rows * Wo * C) * x.dtype.itemsize))

    out = pl.pallas_call(
        _avgpool_kernel,
        out_shape=jax.ShapeDtypeStruct((rows, Wo, C), x_nchw.dtype),
        grid_spec=pltpu.PrefetchScalarGridSpec(
            num_scalar_prefetch=0,
            grid=grid,
            in_specs=[pl.BlockSpec((tm, 2, Wo, 2 * C), lambda i: (i, 0, 0, 0))],
            out_specs=pl.BlockSpec((tm, Wo, C), lambda i: (i, 0, 0)),
        ),
        compiler_params=pltpu.CompilerParams(
            dimension_semantics=("parallel",),
            vmem_limit_bytes=_VMEM_LIMIT),
        cost_estimate=cost,
    )(xr)

    return jnp.transpose(out.reshape(B, Ho, Wo, C), (0, 3, 1, 2))    # -> NCHW


# ------------------------------ module --------------------------------------

class Downsample:
    def __init__(self, in_channels, with_conv, key):
        self.with_conv = with_conv
        if with_conv:
            kw, kb = jax.random.split(key)
            fan_in = in_channels * 3 * 3
            bound = 1.0 / (fan_in ** 0.5)   # PyTorch Conv2d default init range
            self.weight = jax.random.uniform(
                kw, (in_channels, in_channels, 3, 3),
                minval=-bound, maxval=bound, dtype=jnp.float32)
            self.bias = jax.random.uniform(
                kb, (in_channels,), minval=-bound, maxval=bound,
                dtype=jnp.float32)

    def __call__(self, x, *, block_rows=None):
        if self.with_conv:
            return conv_downsample(x, self.weight, self.bias,
                                   block_rows=block_rows)
        return avgpool_downsample(x)


# --------------------------- reference (pure JAX) ----------------------------

def _ref_conv(x, weight, bias):
    xp = jnp.pad(x, ((0, 0), (0, 0), (0, 1), (0, 1)))
    y = jax.lax.conv_general_dilated(
        xp, weight, window_strides=(2, 2), padding="VALID",
        dimension_numbers=("NCHW", "OIHW", "NCHW"))
    return y + bias.reshape(1, -1, 1, 1)


def _ref_avgpool(x):
    B, C, H, W = x.shape
    return x.reshape(B, C, H // 2, 2, W // 2, 2).mean(axis=(3, 5))


# -------------------------------- main ---------------------------------------

if __name__ == "__main__":
    key = jax.random.PRNGKey(0)
    kx, kp = jax.random.split(key)
    x = jax.random.normal(kx, (2, 4, 16, 16), dtype=jnp.float32)

    # with_conv=True (single-block path: default block-row selection)
    mod_conv = Downsample(in_channels=4, with_conv=True, key=kp)
    y_conv = jax.block_until_ready(mod_conv(x))
    y_conv_ref = _ref_conv(x, mod_conv.weight, mod_conv.bias)
    assert y_conv.shape == (2, 4, 8, 8), y_conv.shape
    assert jnp.allclose(y_conv, y_conv_ref, atol=1e-4, rtol=1e-4), (
        float(jnp.max(jnp.abs(y_conv - y_conv_ref))))

    # with_conv=True (multi-block path: exercises the halo row-pair operand)
    y_conv_mb = jax.block_until_ready(mod_conv(x, block_rows=4))
    assert y_conv_mb.shape == (2, 4, 8, 8), y_conv_mb.shape
    assert jnp.allclose(y_conv_mb, y_conv_ref, atol=1e-4, rtol=1e-4), (
        float(jnp.max(jnp.abs(y_conv_mb - y_conv_ref))))

    # with_conv=False
    mod_pool = Downsample(in_channels=4, with_conv=False, key=kp)
    y_pool = jax.block_until_ready(mod_pool(x))
    y_pool_ref = _ref_avgpool(x)
    assert y_pool.shape == (2, 4, 8, 8), y_pool.shape
    assert jnp.allclose(y_pool, y_pool_ref, atol=1e-5, rtol=1e-5)

    print("KERNEL_OK")
</pallas_src>

<mosaic_0001>
module attributes {stable_mosaic.version = 11 : i64} {
  func.func @_conv_kernel(%arg0: i32, %arg1: i32, %arg2: memref<1x8x2x9x8xf32, #tpu.memory_space<vmem>>, %arg3: memref<1x1x1x9x8xf32, #tpu.memory_space<vmem>>, %arg4: memref<3x8x4xf32, #tpu.memory_space<vmem>>, %arg5: memref<3x4x4xf32, #tpu.memory_space<vmem>>, %arg6: memref<1x4xf32, #tpu.memory_space<vmem>>, %arg7: memref<1x64x4xf32, #tpu.memory_space<vmem>>) attributes {dimension_semantics = [#tpu.dimension_semantics<parallel>, #tpu.dimension_semantics<parallel>], iteration_bounds = array<i64: 2, 1>, scalar_prefetch = 0 : i64, scratch_operands = 0 : i64, tpu.core_type = #tpu.core_type<tc>, window_params = [{transform_indices = @transform_0, window_bounds = array<i64: 1, 8, 2, 9, 8>}, {transform_indices = @transform_1, window_bounds = array<i64: 1, 1, 1, 9, 8>}, {pipeline_mode = #tpu.pipeline_mode<synchronous>, transform_indices = @transform_2, window_bounds = array<i64: 3, 8, 4>}, {pipeline_mode = #tpu.pipeline_mode<synchronous>, transform_indices = @transform_3, window_bounds = array<i64: 3, 4, 4>}, {pipeline_mode = #tpu.pipeline_mode<synchronous>, transform_indices = @transform_4, window_bounds = array<i64: 1, 4>}, {transform_indices = @transform_5, window_bounds = array<i64: 1, 64, 4>}]} {
    %c0 = arith.constant 0 : index
    %c0_0 = arith.constant 0 : index
    %c0_1 = arith.constant 0 : index
    %c0_2 = arith.constant 0 : index
    %c0_3 = arith.constant 0 : index
    %0 = vector.load %arg2[%c0, %c0_0, %c0_1, %c0_2, %c0_3] : memref<1x8x2x9x8xf32, #tpu.memory_space<vmem>>, vector<1x8x2x9x8xf32>
    %1 = vector.shape_cast %0 : vector<1x8x2x9x8xf32> to vector<8x2x9x8xf32>
    %c0_4 = arith.constant 0 : index
    %c0_5 = arith.constant 0 : index
    %c0_6 = arith.constant 0 : index
    %c0_7 = arith.constant 0 : index
    %c0_8 = arith.constant 0 : index
    %2 = vector.load %arg3[%c0_4, %c0_5, %c0_6, %c0_7, %c0_8] : memref<1x1x1x9x8xf32, #tpu.memory_space<vmem>>, vector<1x1x1x9x8xf32>
    %3 = vector.shape_cast %2 : vector<1x1x1x9x8xf32> to vector<9x8xf32>
    %4 = vector.extract_strided_slice %1 {offsets = [0, 0, 0, 0], sizes = [8, 1, 9, 8], strides = [1, 1, 1, 1]} : vector<8x2x9x8xf32> to vector<8x1x9x8xf32>
    %5 = vector.shape_cast %4 : vector<8x1x9x8xf32> to vector<8x9x8xf32>
    %6 = vector.extract_strided_slice %1 {offsets = [0, 1, 0, 0], sizes = [8, 1, 9, 8], strides = [1, 1, 1, 1]} : vector<8x2x9x8xf32> to vector<8x1x9x8xf32>
    %7 = vector.shape_cast %6 : vector<8x1x9x8xf32> to vector<8x9x8xf32>
    %8 = vector.extract_strided_slice %1 {offsets = [1, 0, 0, 0], sizes = [7, 1, 9, 8], strides = [1, 1, 1, 1]} : vector<8x2x9x8xf32> to vector<7x1x9x8xf32>
    %9 = vector.shape_cast %8 : vector<7x1x9x8xf32> to vector<7x9x8xf32>
    %10 = vector.shape_cast %3 : vector<9x8xf32> to vector<1x9x8xf32>
    %11 = tpu.concatenate %9, %10 in 0 : vector<7x9x8xf32>, vector<1x9x8xf32> -> vector<8x9x8xf32>
    %cst = arith.constant 0.000000e+00 : f32
    %12 = vector.broadcast %cst : f32 to vector<64x4xf32>
    %13 = vector.extract_strided_slice %5 {offsets = [0, 0, 0], sizes = [8, 8, 8], strides = [1, 1, 1]} : vector<8x9x8xf32> to vector<8x8x8xf32>
    %14 = vector.shape_cast %13 : vector<8x8x8xf32> to vector<64x8xf32>
    %c0_9 = arith.constant 0 : index
    %c0_10 = arith.constant 0 : index
    %c0_11 = arith.constant 0 : index
    %15 = vector.load %arg4[%c0_9, %c0_10, %c0_11] : memref<3x8x4xf32, #tpu.memory_space<vmem>>, vector<1x8x4xf32>
    %16 = vector.shape_cast %15 : vector<1x8x4xf32> to vector<8x4xf32>
    %cst_12 = arith.constant dense<0.000000e+00> : vector<64x4xf32>
    %17 = tpu.matmul %14, %16, %cst_12 {dimension_numbers = #tpu.dot_dimension_numbers<[1], [0], [0], [1], [0, 0, 1, 1], [], []>} : vector<64x8xf32>, vector<8x4xf32>, vector<64x4xf32> -> vector<64x4xf32>
    %18 = arith.addf %12, %17 : vector<64x4xf32>
    %19 = vector.extract_strided_slice %5 {offsets = [0, 1, 0], sizes = [8, 8, 4], strides = [1, 1, 1]} : vector<8x9x8xf32> to vector<8x8x4xf32>
    %20 = vector.shape_cast %19 : vector<8x8x4xf32> to vector<64x4xf32>
    %c0_13 = arith.constant 0 : index
    %c0_14 = arith.constant 0 : index
    %c0_15 = arith.constant 0 : index
    %21 = vector.load %arg5[%c0_13, %c0_14, %c0_15] : memref<3x4x4xf32, #tpu.memory_space<vmem>>, vector<1x4x4xf32>
    %22 = vector.shape_cast %21 : vector<1x4x4xf32> to vector<4x4xf32>
    %cst_16 = arith.constant dense<0.000000e+00> : vector<64x4xf32>
    %23 = tpu.matmul %20, %22, %cst_16 {dimension_numbers = #tpu.dot_dimension_numbers<[1], [0], [0], [1], [0, 0, 1, 1], [], []>} : vector<64x4xf32>, vector<4x4xf32>, vector<64x4xf32> -> vector<64x4xf32>
    %24 = arith.addf %18, %23 : vector<64x4xf32>
    %25 = vector.extract_strided_slice %7 {offsets = [0, 0, 0], sizes = [8, 8, 8], strides = [1, 1, 1]} : vector<8x9x8xf32> to vector<8x8x8xf32>
    %26 = vector.shape_cast %25 : vector<8x8x8xf32> to vector<64x8xf32>
    %c1 = arith.constant 1 : index
    %c0_17 = arith.constant 0 : index
    %c0_18 = arith.constant 0 : index
    %27 = vector.load %arg4[%c1, %c0_17, %c0_18] : memref<3x8x4xf32, #tpu.memory_space<vmem>>, vector<1x8x4xf32>
    %28 = vector.shape_cast %27 : vector<1x8x4xf32> to vector<8x4xf32>
    %cst_19 = arith.constant dense<0.000000e+00> : vector<64x4xf32>
    %29 = tpu.matmul %26, %28, %cst_19 {dimension_numbers = #tpu.dot_dimension_numbers<[1], [0], [0], [1], [0, 0, 1, 1], [], []>} : vector<64x8xf32>, vector<8x4xf32>, vector<64x4xf32> -> vector<64x4xf32>
    %30 = arith.addf %24, %29 : vector<64x4xf32>
    %31 = vector.extract_strided_slice %7 {offsets = [0, 1, 0], sizes = [8, 8, 4], strides = [1, 1, 1]} : vector<8x9x8xf32> to vector<8x8x4xf32>
    %32 = vector.shape_cast %31 : vector<8x8x4xf32> to vector<64x4xf32>
    %c1_20 = arith.constant 1 : index
    %c0_21 = arith.constant 0 : index
    %c0_22 = arith.constant 0 : index
    %33 = vector.load %arg5[%c1_20, %c0_21, %c0_22] : memref<3x4x4xf32, #tpu.memory_space<vmem>>, vector<1x4x4xf32>
    %34 = vector.shape_cast %33 : vector<1x4x4xf32> to vector<4x4xf32>
    %cst_23 = arith.constant dense<0.000000e+00> : vector<64x4xf32>
    %35 = tpu.matmul %32, %34, %cst_23 {dimension_numbers = #tpu.dot_dimension_numbers<[1], [0], [0], [1], [0, 0, 1, 1], [], []>} : vector<64x4xf32>, vector<4x4xf32>, vector<64x4xf32> -> vector<64x4xf32>
    %36 = arith.addf %30, %35 : vector<64x4xf32>
    %37 = vector.extract_strided_slice %11 {offsets = [0, 0, 0], sizes = [8, 8, 8], strides = [1, 1, 1]} : vector<8x9x8xf32> to vector<8x8x8xf32>
    %38 = vector.shape_cast %37 : vector<8x8x8xf32> to vector<64x8xf32>
    %c2 = arith.constant 2 : index
    %c0_24 = arith.constant 0 : index
    %c0_25 = arith.constant 0 : index
    %39 = vector.load %arg4[%c2, %c0_24, %c0_25] : memref<3x8x4xf32, #tpu.memory_space<vmem>>, vector<1x8x4xf32>
    %40 = vector.shape_cast %39 : vector<1x8x4xf32> to vector<8x4xf32>
    %cst_26 = arith.constant dense<0.000000e+00> : vector<64x4xf32>
    %41 = tpu.matmul %38, %40, %cst_26 {dimension_numbers = #tpu.dot_dimension_numbers<[1], [0], [0], [1], [0, 0, 1, 1], [], []>} : vector<64x8xf32>, vector<8x4xf32>, vector<64x4xf32> -> vector<64x4xf32>
    %42 = arith.addf %36, %41 : vector<64x4xf32>
    %43 = vector.extract_strided_slice %11 {offsets = [0, 1, 0], sizes = [8, 8, 4], strides = [1, 1, 1]} : vector<8x9x8xf32> to vector<8x8x4xf32>
    %44 = vector.shape_cast %43 : vector<8x8x4xf32> to vector<64x4xf32>
    %c2_27 = arith.constant 2 : index
    %c0_28 = arith.constant 0 : index
    %c0_29 = arith.constant 0 : index
    %45 = vector.load %arg5[%c2_27, %c0_28, %c0_29] : memref<3x4x4xf32, #tpu.memory_space<vmem>>, vector<1x4x4xf32>
    %46 = vector.shape_cast %45 : vector<1x4x4xf32> to vector<4x4xf32>
    %cst_30 = arith.constant dense<0.000000e+00> : vector<64x4xf32>
    %47 = tpu.matmul %44, %46, %cst_30 {dimension_numbers = #tpu.dot_dimension_numbers<[1], [0], [0], [1], [0, 0, 1, 1], [], []>} : vector<64x4xf32>, vector<4x4xf32>, vector<64x4xf32> -> vector<64x4xf32>
    %48 = arith.addf %42, %47 : vector<64x4xf32>
    %c0_31 = arith.constant 0 : index
    %c0_32 = arith.constant 0 : index
    %49 = vector.load %arg6[%c0_31, %c0_32] : memref<1x4xf32, #tpu.memory_space<vmem>>, vector<1x4xf32>
    %50 = vector.broadcast %49 : vector<1x4xf32> to vector<64x4xf32>
    %51 = arith.addf %48, %50 : vector<64x4xf32>
    %c0_33 = arith.constant 0 : index
    %c0_34 = arith.constant 0 : index
    %c0_35 = arith.constant 0 : index
    %52 = vector.load %arg7[%c0_33, %c0_34, %c0_35] : memref<1x64x4xf32, #tpu.memory_space<vmem>>, vector<1x64x4xf32>
    %53 = vector.shape_cast %52 : vector<1x64x4xf32> to vector<64x4xf32>
    %54 = vector.shape_cast %51 : vector<64x4xf32> to vector<1x64x4xf32>
    tpu.vector_store %arg7[%c0_33, %c0_34, %c0_35], %54 {strides = array<i32>} : memref<1x64x4xf32, #tpu.memory_space<vmem>>, vector<1x64x4xf32>,
    return
  }
  func.func @transform_0(%arg0: i32, %arg1: i32) -> (i32, i32, i32, i32, i32) {
    %c0_i32 = arith.constant 0 : i32
    %c0_i32_0 = arith.constant 0 : i32
    %c0_i32_1 = arith.constant 0 : i32
    %c0_i32_2 = arith.constant 0 : i32
    return %arg0, %arg1, %c0_i32, %c0_i32_0, %c0_i32_1 : i32, i32, i32, i32, i32
  }
  func.func @transform_1(%arg0: i32, %arg1: i32) -> (i32, i32, i32, i32, i32) {
    %c1_i32 = arith.constant 1 : i32
    %0 = arith.addi %arg1, %c1_i32 : i32
    %c8_i32 = arith.constant 8 : i32
    %1 = arith.muli %0, %c8_i32 : i32
    %c0_i32 = arith.constant 0 : i32
    %c0_i32_0 = arith.constant 0 : i32
    %c0_i32_1 = arith.constant 0 : i32
    %c0_i32_2 = arith.constant 0 : i32
    return %arg0, %1, %c0_i32, %c0_i32_0, %c0_i32_1 : i32, i32, i32, i32, i32
  }
  func.func @transform_2(%arg0: i32, %arg1: i32) -> (i32, i32, i32) {
    %c0_i32 = arith.constant 0 : i32
    %c0_i32_0 = arith.constant 0 : i32
    %c0_i32_1 = arith.constant 0 : i32
    %c0_i32_2 = arith.constant 0 : i32
    return %c0_i32, %c0_i32_0, %c0_i32_1 : i32, i32, i32
  }
  func.func @transform_3(%arg0: i32, %arg1: i32) -> (i32, i32, i32) {
    %c0_i32 = arith.constant 0 : i32
    %c0_i32_0 = arith.constant 0 : i32
    %c0_i32_1 = arith.constant 0 : i32
    %c0_i32_2 = arith.constant 0 : i32
    return %c0_i32, %c0_i32_0, %c0_i32_1 : i32, i32, i32
  }
  func.func @transform_4(%arg0: i32, %arg1: i32) -> (i32, i32) {
    %c0_i32 = arith.constant 0 : i32
    %c0_i32_0 = arith.constant 0 : i32
    %c0_i32_1 = arith.constant 0 : i32
    return %c0_i32, %c0_i32_0 : i32, i32
  }
  func.func @transform_5(%arg0: i32, %arg1: i32) -> (i32, i32, i32) {
    %c0_i32 = arith.constant 0 : i32
    %c0_i32_0 = arith.constant 0 : i32
    return %arg0, %arg1, %c0_i32 : i32, i32, i32
  }
}

</mosaic_0001>

<bundles_post_ra>
// kernel: conv_downsample.1
= control target key start
LH: loop header
LB: loop body
LE: loop exit
PB: predicated region body
PF: predicated region fallthrough
CT: control target
= control target key end

     0   :  { %s2602_s0 = inlined_call_operand.hbm [shape: f32[2,9,2,9,8], index: 0, kind: input, shape index: {}, may-alias: {0,1}]   ;;  %s2603_s1 = inlined_call_operand.hbm [shape: f32[2,9,2,9,8], index: 1, kind: input, shape index: {}, may-alias: {0,1}]   ;;  %s2604_s2 = inlined_call_operand.hbm [shape: f32[3,8,4], index: 2, kind: input, shape index: {}]   ;;  %s2605_s3 = inlined_call_operand.hbm [shape: f32[3,4,4], index: 3, kind: input, shape index: {}]   ;;  %s2606_s4 = inlined_call_operand.hbm [shape: f32[1,4], index: 4, kind: input, shape index: {}]   ;;  %s2607_s5 = inlined_call_operand.hbm [shape: f32[2,64,4], index: 5, kind: output, shape index: {}]  }
   0x1   :  { %2616 = sst [smem:[#allocation19_spill]] %s2602_s0 }
   0x2   :  { %2617 = sst [smem:[#allocation20_spill]] %s2604_s2 }
   0x3   :  { %2618 = sst [smem:[#allocation21_spill]] %s2605_s3 }
   0x4   :  { %2619 = sst [smem:[#allocation22_spill]] %s2606_s4 }
   0x5   :  { %10 = vsyncpa [#allocation3], 0 }
   0x6   :  { %12 = vsyncpa [#allocation3 + $0x1], 0 }
   0x7   :  { %13 = vsyncpa [#allocation6], 0 }
   0x8   :  { %15 = vsyncpa [#allocation6 + $0x1], 0 }
   0x9   :  { %16 = vsyncpa [#allocation9], 0 }
   0xa   :  { %17 = vsyncpa [#allocation4], 0 }
   0xb   :  { %19 = vsyncpa [#allocation4 + $0x1], 0  ;;  %s2067_s18 = smov 0   ;;  %s2069_s19 = smov 0  }
   0xc   :  { %s2071_s20 = smov 0   ;;  %s2073_s21 = smov 0  }
   0xd   :  { %s2075_s22 = smov 0   ;;  %s2077_s23 = smov 0  }
   0xe LB: > { %s2098_s24 = sadd.s32 4294967295, %s2023_s23   ;;  %s1426_s25 = sadd.s32 4294967294, %s2023_s23   ;;  %s2023_s23 = sphi %s2077_s23, %s25_s23   ;;  %s2019_s22 = sphi %s2075_s22, %s2651_s22   ;;  %s2015_s21 = sphi %s2073_s21, %s2650_s21   ;;  %s2011_s20 = sphi %s2071_s20, %s2649_s20   ;;  %s2007_s19 = sphi %s2069_s19, %s2648_s19   ;;  %s2003_s18 = sphi %s2067_s18, %s2647_s18  }
   0xf   : > { %p59_p0 = scmp.ne.s32.totalorder %s2007_s19, %s2003_s18  ;;  %p2608_p1 = scmp.eq.s32.totalorder %s2098_s24, 0 }
  0x10   : > { %p186_p3 = scmp.eq.s32.totalorder %s1426_s25, 1  ;;  %p1427_p5 = scmp.ge.s32.totalorder %s2023_s23, 1 }
  0x11   : > { %p2107_p4 = por %p2608_p1, %p59_p0  ;;  %p193_p7 = scmp.lt.s32.totalorder %s2023_s23, 3 }
  0x12   : > { %p2112_p6 = por %p186_p3, %p59_p0  ;;  %s2025_s29 = smov [#allocation7]  }
  0x13   : > { %s2620_s26 = scalar_select %p2107_p4, 1, 0 }
  0x14   : > { %s2621_s27 = scalar_select %p2112_p6, 1, 0 }
  0x15   : > { %p2117_p8 = pnand %p1427_p5, %p193_p7  ;;  %s205_s30 = sshll.u32 %s2025_s29, 4  ;;  %s2121_s30 = int_to_ptr.vmem [resolvable:$true] %s205_s30 }
  0x16   : > { %s2026_s7 = smov [#allocation8]   ;;  %s2624_s2 = sld [smem:[#allocation20_spill]] }
  0x17   : > { %s2622_s28 = scalar_select %p2117_p8, 1, 0 }
  0x18   : > { %p1698_p9 = pneg %p2117_p8  ;;  %s218_s8 = sshll.u32 %s2026_s7, 4  ;;  %s2132_s8 = int_to_ptr.vmem [resolvable:$true] %s218_s8 }
  0x1a   : > { %p2128_p11 = pnand %p1698_p9, %p2608_p1 }
  0x1c   : > { %s1784_s11 = scalar_lea.hbm %s2624_s2, 384  ;;  %p2142_p13 = pneg %p2128_p11 }
  0x1d   : > { %p1785_p12 = scmp.ne.s32.totalorder %s2624_s2, %s1784_s11  ;;  %p1791_p5 = scmp.lt.u32.totalorder %s1784_s11, %s2624_s2 }
  0x1f   : > { %p1787_p0 = pnand %p2142_p13, %p1785_p12 }
  0x21   : > { %p1788_p3 = pneg %p1787_p0 }
  0x23   : > { %p1793_p7 = pnand %p1791_p5, %p1788_p3 }
  0x25   : > { %1796 = shalt.err (!%p1793_p7)
}
  0x26   : > { %s1797_s17 = scalar_lea.vmem %s2121_s30, 384  ;;  %p1805_p2 = scmp.lt.s32.totalorder %s2121_s30, %s2121_s30 }
  0x27   : > { %p1798_p9 = scmp.ne.s32.totalorder %s2121_s30, %s1797_s17  ;;  %p1806_p6 = scmp.lt.s32.totalorder %s1797_s17, %s1797_s17 }
  0x29   : > { %p1800_p10 = pnand %p1798_p9, %p2142_p13  ;;  %p1807_p12 = por %p1806_p6, %p1805_p2 }
  0x2b   : > { %p1801_p1 = pneg %p1800_p10 }
  0x2d   : > { %p1808_p0 = pnand %p1807_p12, %p1801_p1 }
  0x2f   : > { %1811 = shalt.err (!%p1808_p0)
}
  0x30   : > { %s2609_s25 = smov 128   ;;  %s2611_s29 = smov 8  }
  0x31   : > { %1701 = dma.hbm_to_vmem [thread:$0]  (!%p2128_p11), %s2624_s2, 384, %s2121_s30, [#allocation6], %s2609_s25, %s2609_s25, %s2611_s29  }
  0x32   : > { %s2626_s3 = sld [smem:[#allocation21_spill]] }
  0x38   : > { %s1812_s12 = scalar_lea.hbm %s2626_s3, 192 }
  0x39   : > { %p1813_p1 = scmp.ne.s32.totalorder %s2626_s3, %s1812_s12  ;;  %p1819_p10 = scmp.lt.u32.totalorder %s1812_s12, %s2626_s3 }
  0x3b   : > { %p1815_p2 = pnand %p1813_p1, %p2142_p13 }
  0x3d   : > { %p1816_p6 = pneg %p1815_p2 }
  0x3f   : > { %p1821_p3 = pnand %p1819_p10, %p1816_p6 }
  0x41   : > { %1824 = shalt.err (!%p1821_p3)
}
  0x42   : > { %s1825_s30 = scalar_lea.vmem %s2132_s8, 192  ;;  %p1833_p12 = scmp.lt.s32.totalorder %s2132_s8, %s2132_s8 }
  0x43   : > { %p1826_p5 = scmp.ne.s32.totalorder %s2132_s8, %s1825_s30  ;;  %p1834_p0 = scmp.lt.s32.totalorder %s1825_s30, %s1825_s30 }
  0x45   : > { %p1828_p7 = pnand %p1826_p5, %p2142_p13  ;;  %p1835_p1 = por %p1834_p0, %p1833_p12 }
  0x47   : > { %p1829_p9 = pneg %p1828_p7 }
  0x49   : > { %p1836_p2 = pnand %p1835_p1, %p1829_p9 }
  0x4b   : > { %1839 = shalt.err (!%p1836_p2)
}
  0x4c   : > { %s2029_s7 = smov 64   ;;  %s2030_s9 = smov 4  }
  0x4d   : > { %1704 = dma.hbm_to_vmem [thread:$0]  (!%p2128_p11), %s2626_s3, 192, %s2132_s8, [#allocation9], %s2029_s7, %s2029_s7, %s2030_s9  }
  0x4e   : > { %s2031_s12 = smov [#allocation10]   ;;  %s2627_s4 = sld [smem:[#allocation22_spill]] }
  0x4f   : > { %s232_s13 = sshll.u32 %s2031_s12, 4  ;;  %s233_s13 = int_to_ptr.vmem [resolvable:$true] %s232_s13 }
  0x54   : > { %s1840_s17 = scalar_lea.hbm %s2627_s4, 16 }
  0x55   : > { %p1841_p6 = scmp.ne.s32.totalorder %s2627_s4, %s1840_s17  ;;  %p1847_p5 = scmp.lt.u32.totalorder %s1840_s17, %s2627_s4 }
  0x57   : > { %p1843_p10 = pnand %p1841_p6, %p2142_p13 }
  0x59   : > { %p1844_p3 = pneg %p1843_p10 }
  0x5b   : > { %p1849_p7 = pnand %p1847_p5, %p1844_p3 }
  0x5d   : > { %1852 = shalt.err (!%p1849_p7)
}
  0x5e   : > { %s1853_s8 = scalar_lea.vmem %s233_s13, 16  ;;  %s1860_s7 = scalar_lea.vmem %s233_s13, 32 }
  0x5f   : > { %p1854_p9 = scmp.ne.s32.totalorder %s233_s13, %s1853_s8  ;;  %p1861_p1 = scmp.lt.s32.totalorder %s233_s13, %s233_s13 }
  0x60   : > { %p1862_p2 = scmp.lt.s32.totalorder %s1860_s7, %s1853_s8 }
  0x61   : > { %p1856_p12 = pnand %p1854_p9, %p2142_p13 }
  0x62   : > { %p1863_p4 = por %p1862_p2, %p1861_p1 }
  0x63   : > { %p1857_p0 = pneg %p1856_p12 }
  0x65   : > { %p1864_p8 = pnand %p1863_p4, %p1857_p0 }
  0x67   : > { %1867 = shalt.err (!%p1864_p8)
}
  0x68   : > { %1707 = dma.hbm_to_vmem [thread:$0]  (!%p2128_p11), %s2627_s4, 16, %s233_s13, [#allocation9]  }
  0x69   : > { %s37_s2 = sadd.s32 1, %s2019_s22  ;;  %s46_s14 = sadd.s32 1, %s2011_s20 }
  0x6a   : > { %p39_p4 = scmp.ge.s32.totalorder %s37_s2, 2  ;;  %p53_p8 = scmp.ne.s32.totalorder %s2011_s20, %s2007_s19 }
  0x6b   : > { %p54_p13 = scmp.eq.s32.totalorder %s2023_s23, 0  ;;  %p2629_p10 = scmp.eq.s32.totalorder %s2098_s24, 1 }
  0x6c   : > { %s2653_s2 = smov (%p39_p4, %s37_s2), 0  ;;  %p1722_p5 = scmp.lt.s32.totalorder %s2023_s23, 2 }
  0x6d   : > { %2628 = sst [smem:[#allocation17_spill]] %s2653_s2  ;;  %p55_p6 = por %p54_p13, %p53_p8 }
  0x6e   : > { %p2216_p3 = por %p2629_p10, %p53_p8  ;;  %s41_s29 = ssub.s32 %s2019_s22, %s2653_s2 }
  0x6f   : > { %p44_p7 = scmp.eq.s32.totalorder %s41_s29, 0  ;;  %s2224_s10 = sand.u32 1, %s2011_s20  }
  0x70   : > { %s1432_s11 = sshll.u32 %s2224_s10, 8  ;;  %s1679_s13 = smul.u32 4608, %s2019_s22 }
  0x71   : > { %s2228_s12 = scalar_select %p44_p7, %s2011_s20, %s46_s14  }
  0x72   : > { %s247_s15 = scalar_lea.vmem [#allocation2], %s1432_s11  ;;  %p2231_p11 = pnand %p1722_p5, %p55_p6 }
  0x73   : > { %2631 = sst [smem:[#allocation18_spill]] %s2228_s12  ;;  %s266_s16 = sshll.u32 %s247_s15, 4  ;;  %s2242_s16 = int_to_ptr.vmem [resolvable:$true] %s266_s16 }
  0x74   : > { %s2633_s0 = sld [smem:[#allocation19_spill]]  ;;  %s244_s9 = scalar_lea.sflag [#allocation3], %s2224_s10 }
  0x75   : > { %p1870_p12 = pneg %p2231_p11 }
  0x7a   : > { %s2240_s7 = scalar_lea.hbm %s2633_s0, %s1679_s13  ;;  %s1873_s15 = scalar_lea.hbm %s2633_s0, 9216 }
  0x7b   : > { %s1868_s14 = scalar_lea.hbm %s2240_s7, 4096  ;;  %p1874_p2 = scmp.lt.u32.totalorder %s2240_s7, %s2633_s0 }
  0x7c   : > { %p1869_p9 = scmp.ne.s32.totalorder %s2240_s7, %s1868_s14  ;;  %p1875_p4 = scmp.lt.u32.totalorder %s1873_s15, %s1868_s14 }
  0x7d   : > { %p1877_p13 = scmp.lt.u32.totalorder %s1868_s14, %s2240_s7 }
  0x7e   : > { %p1871_p0 = pnand %p1870_p12, %p1869_p9  ;;  %p1876_p8 = por %p1875_p4, %p1874_p2 }
  0x80   : > { %p1872_p1 = pneg %p1871_p0  ;;  %p1878_p6 = por %p1877_p13, %p1876_p8 }
  0x82   : > { %p1879_p10 = pnand %p1878_p6, %p1872_p1 }
  0x84   : > { %1882 = shalt.err (!%p1879_p10)
}
  0x85   : > { %s1883_s25 = scalar_lea.vmem %s2242_s16, 4096  ;;  %s2032_s29 = smov [#allocation2]  }
  0x86   : > { %p1884_p5 = scmp.ne.s32.totalorder %s2242_s16, %s1883_s25  ;;  %s1888_s11 = sshll.u32 %s2032_s29, 4  ;;  %s1889_s11 = int_to_ptr.vmem [resolvable:$false] %s1888_s11 }
  0x87   : > { %s1890_s30 = scalar_lea.vmem %s1889_s11, 8192  ;;  %p1891_p0 = scmp.lt.s32.totalorder %s2242_s16, %s1889_s11 }
  0x88   : > { %p1886_p7 = pnand %p1884_p5, %p1870_p12  ;;  %p1892_p2 = scmp.lt.s32.totalorder %s1890_s30, %s1883_s25 }
  0x8a   : > { %p1887_p9 = pneg %p1886_p7  ;;  %p1893_p4 = por %p1892_p2, %p1891_p0 }
  0x8c   : > { %p1894_p8 = pnand %p1893_p4, %p1887_p9 }
  0x8e   : > { %1897 = shalt.err (!%p1894_p8)
}
  0x8f   : > { %s2634_s14 = smov 8   ;;  %s2635_s15 = smov 128  }
  0x90   : > { %1711 = dma.hbm_to_vmem [thread:$0]  (!%p2231_p11), %s2240_s7, 4096, %s2242_s16, %s244_s9, %s2635_s15, %s2635_s15, %s2634_s14  }
  0x91   : > { %s1434_s8 = sshll.u32 %s2224_s10, 4  ;;  %s1329_s11 = scalar_lea.hbm %s2603_s1, %s1679_s13 }
  0x92   : > { %s2282_s30 = scalar_lea.hbm %s1329_s11, 4096  ;;  %s280_s0 = scalar_lea.vmem [#allocation5], %s1434_s8 }
  0x93   : > { %s291_s3 = sshll.u32 %s280_s0, 4  ;;  %s2636_s4 = sand.u32 1, %s2023_s23   ;;  %s2284_s3 = int_to_ptr.vmem [resolvable:$true] %s291_s3 }
  0x94   : > { %s2288_s2 = scalar_lea.sflag [#allocation6], %s2636_s4  ;;  %s1928_s12 = scalar_lea.hbm %s1329_s11, 4352 }
  0x95   : > { %p1899_p1 = scmp.ne.s32.totalorder %s2282_s30, %s1928_s12  ;;  %s1903_s16 = scalar_lea.hbm %s2603_s1, 9216 }
  0x96   : > { %p1904_p10 = scmp.lt.u32.totalorder %s2282_s30, %s2603_s1  ;;  %p1905_p5 = scmp.lt.u32.totalorder %s1903_s16, %s1928_s12 }
  0x97   : > { %p1901_p13 = pnand %p1899_p1, %p1870_p12  ;;  %p1907_p9 = scmp.lt.u32.totalorder %s1928_s12, %s2282_s30 }
  0x98   : > { %p1906_p7 = por %p1905_p5, %p1904_p10 }
  0x99   : > { %p1902_p6 = pneg %p1901_p13 }
  0x9a   : > { %p1908_p0 = por %p1907_p9, %p1906_p7 }
  0x9c   : > { %p1909_p2 = pnand %p1908_p0, %p1902_p6 }
  0x9e   : > { %1912 = shalt.err (!%p1909_p2)
}
  0x9f   : > { %s1913_s0 = scalar_lea.vmem %s2284_s3, 256  ;;  %s2033_s4 = smov [#allocation5]  }
  0xa0   : > { %p1914_p4 = scmp.ne.s32.totalorder %s2284_s3, %s1913_s0  ;;  %s1918_s8 = sshll.u32 %s2033_s4, 4  ;;  %s1919_s8 = int_to_ptr.vmem [resolvable:$false] %s1918_s8 }
  0xa1   : > { %s1920_s25 = scalar_lea.vmem %s1919_s8, 512  ;;  %p1921_p13 = scmp.lt.s32.totalorder %s2284_s3, %s1919_s8 }
  0xa2   : > { %p1916_p8 = pnand %p1914_p4, %p1870_p12  ;;  %p1922_p10 = scmp.lt.s32.totalorder %s1920_s25, %s1913_s0 }
  0xa4   : > { %p1917_p1 = pneg %p1916_p8  ;;  %p1923_p5 = por %p1922_p10, %p1921_p13 }
  0xa6   : > { %p1924_p7 = pnand %p1923_p5, %p1917_p1 }
  0xa8   : > { %1927 = shalt.err (!%p1924_p7)
}
  0xa9   : > { %1714 = dma.hbm_to_vmem [thread:$0]  (!%p2231_p11), %s2282_s30, 256, %s2284_s3, %s2288_s2, %s2635_s15, %s2635_s15, %s2634_s14  }
  0xaa   : > { %p2637_p12 = scmp.ne.s32.totalorder %s2622_s28, 0 }
  0xab   : > { %s2319_s12 = sand.u32 (!%p2637_p12), 1, %s2007_s19   ;;  %p2638_p6 = scmp.ne.s32.totalorder (!%p2637_p12), %s2620_s26, 0 }
  0xac   : > { %303 = sbr.rel (%p2637_p12) target bundleno = 474 (0x1da), region = 40  ;;  %s1437_s29 = sshll.u32 (!%p2637_p12), %s2319_s12, 8 }
  0xad   : > { %s306_s11 = scalar_lea.sflag (!%p2637_p12), [#allocation3], %s2319_s12  ;;  %s2323_s10 = scalar_lea.vmem (!%p2637_p12), [#allocation2], %s1437_s29 }
  0xb3   : > { %1982 = dma.done.wait (%p2638_p6), %s306_s11, 4096  }
  0xb4   : > { %1984 = vsyncadd (%p2638_p6), %s306_s11, 4294963200  ;;  %s314_s3 = sand.u32 1, %s2098_s24   ;;  %s1438_s28 = sshll.u32 %s2319_s12, 4 }
  0xb5   : > { %s315_s2 = scalar_lea.sflag [#allocation6], %s314_s3  ;;  %s2331_s17 = scalar_lea.vmem [#allocation5], %s1438_s28 }
  0xb6   : > { %1986 = dma.done.wait (%p2638_p6), %s315_s2, 256  }
  0xb7   : > { %1988 = vsyncadd (%p2638_p6), %s315_s2, 4294967040  ;;  %p2639_p11 = scmp.eq.s32.totalorder %s2098_s24, 0 }
  0xb9   : > { %1990 = dma.done.wait (%p2639_p11), [#allocation6], 384   ;;  %p2640_p9 = pmov %p2639_p11 }
  0xbb   : > { %1992 = vsyncadd (%p2640_p9), [#allocation6], 4294966912  ;;  %p2641_p0 = pmov %p2640_p9 }
  0xbd   : > { %1994 = dma.done.wait (%p2641_p0), [#allocation9], 208   ;;  %p2642_p2 = pmov %p2641_p0 }
  0xbe   : > { %vm466_vm0 = vcmask 1043456   ;;  %v448_v0 = vld [vmem:[#allocation8] sm:$0xf]  ;;  %v869_v1 = vld [vmem:[#allocation8 + $0x4] sm:$0xf]  ;;  %v2346_v2 = vld [vmem:[%s2323_s10] sm:$0xff] }
  0xbf   : > { %1996 = vsyncadd (%p2642_p2), [#allocation9], 4294967088  ;;  %vm423_vm1 = vcmask 1046528   ;;  %1555 = vmatprep.subr.msk.mxu1 %vm466_vm0, %v448_v0  ;;  %1597 = vmatprep.subr.msk.mxu0 %vm466_vm0, %v869_v1  ;;  %v373_v3 = vld [vmem:[%s2323_s10 + $0x8] sm:$0x1]  ;;  %v424_v4 = vrot.slane %v2346_v2, 1 }
  0xc0   : > { %vm449_vm2 = vcmask 31744   ;;  %v406_v5 = vld [vmem:[#allocation7] sm:$0xff]  ;;  %v2353_v6 = vld [vmem:[%s2323_s10 + $0x10] sm:$0xff]  ;;  %1556 = vmatpush3.msk.msra.mxu1 %vm466_vm0, %v448_v0  ;;  %1598 = vmatpush3.msk.msra.mxu0 %vm466_vm0, %v869_v1  ;;  %v425_v7 = vrot.slane %v373_v3, 1  ;;  %v375_v8 = vld [vmem:[%s2323_s10 + $0x18] sm:$0x1] }
  0xc1   : > { %v844_v9 = vrot.slane %v2353_v6, 1  ;;  %v1003_v10 = vld [vmem:[#allocation7 + $0x10] sm:$0xff]  ;;  %v2360_v11 = vld [vmem:[%s2323_s10 + $0x20] sm:$0xff]  ;;  %1569 = vmatprep.subr.mxu1 %v406_v5  ;;  %v845_v12 = vrot.slane %v375_v8, 1  ;;  %v377_v13 = vld [vmem:[%s2323_s10 + $0x28] sm:$0x1] }
  0xc2   : > { %1611 = vmatprep.subr.mxu0 %v1003_v10  ;;  %v427_v14 = vrot.slane %v2360_v11, 1  ;;  %v2365_v15 = vld [vmem:[%s2323_s10 + $0x30] sm:$0xff]  ;;  %v2368_v16 = vld [vmem:[%s2323_s10 + $0x40] sm:$0xff]  ;;  %v426_v17 = vsel %vm423_vm1, %v424_v4, %v425_v7  ;;  %v428_v18 = vrot.slane %v377_v13, 1  ;;  %v379_v19 = vld [vmem:[%s2323_s10 + $0x38] sm:$0x1] }
  0xc3   : > { %v847_v20 = vrot.slane %v2365_v15, 1  ;;  %v381_v21 = vld [vmem:[%s2323_s10 + $0x48] sm:$0x1]  ;;  %1557 = vmatprep.mubr.msk.f32.mxu1 %vm449_vm2, %v426_v17  ;;  %v846_v22 = vsel %vm423_vm1, %v844_v9, %v845_v12  ;;  %v848_v23 = vrot.slane %v379_v19, 1  ;;  %v430_v24 = vrot.slane %v2368_v16, 1  ;;  %v2378_v26 = vld [vmem:[%s2323_s10 + $0x50] sm:$0xff] }
  0xc4   : > { %v431_v25 = vrot.slane %v381_v21, 1  ;;  %v383_v27 = vld [vmem:[%s2323_s10 + $0x58] sm:$0x1]  ;;  %1599 = vmatprep.mubr.msk.f32.mxu0 %vm449_vm2, %v846_v22  ;;  %v2383_v28 = vsel %vm423_vm1, %v427_v14, %v428_v18  ;;  %v850_v29 = vrot.slane %v2378_v26, 1  ;;  %v2387_v31 = vld [vmem:[%s2323_s10 + $0x60] sm:$0xff]  ;;  %v2391_v33 = vld [vmem:[%s2323_s10 + $0x70] sm:$0xff] }
  0xc5   : > { %v851_v30 = vrot.slane %v383_v27, 1  ;;  %v385_v32 = vld [vmem:[%s2323_s10 + $0x68] sm:$0x1]  ;;  %1558 = vmatmul.mubr.msk.f32.vlgmr.msra.gmra.mrb[0].mxu1 %vm449_vm2, %v2383_v28  ;;  %v849_v34 = vsel %vm423_vm1, %v847_v20, %v848_v23  ;;  %v433_v36 = vrot.slane %v2387_v31, 1  ;;  %v387_v38 = vld [vmem:[%s2323_s10 + $0x78] sm:$0x1] }
  0xc6   : > { %v2397_v35 = vsel %vm423_vm1, %v430_v24, %v431_v25  ;;  %v434_v37 = vrot.slane %v385_v32, 1  ;;  %v2402_v39 = vld [vmem:[%s2323_s10 + $0x80] sm:$0xff]  ;;  %v2405_v40 = vld [vmem:[%s2323_s10 + $0x90] sm:$0xff]  ;;  %1570 = vmatpush3.msra.mxu1 %v406_v5  ;;  %1600 = vmatmul.mubr.msk.f32.vlgmr.msra.gmra.mrb[0].mxu0 %vm449_vm2, %v849_v34  ;;  %v853_v42 = vrot.slane %v2391_v33, 1  ;;  %v854_v43 = vrot.slane %v387_v38, 1  ;;  %v698_v17 = vld [vmem:[#allocation7 + $0x8] sm:$0xff] }
  0xc7   : > { %v852_v41 = vsel %vm423_vm1, %v850_v29, %v851_v30  ;;  %v389_v44 = vld [vmem:[%s2323_s10 + $0x88] sm:$0x1]  ;;  %v436_v45 = vrot.slane %v2402_v39, 1  ;;  %v2413_v46 = vld [vmem:[%s2323_s10 + $0xa0] sm:$0xff]  ;;  %1612 = vmatpush3.msra.mxu0 %v1003_v10  ;;  %1560 = vmatprep.mubr.msk.f32.mxu1 %vm449_vm2, %v2397_v35  ;;  %v391_v49 = vld [vmem:[%s2323_s10 + $0x98] sm:$0x1] }
  0xc8   : > { %v2418_v47 = vsel %vm423_vm1, %v433_v36, %v434_v37  ;;  %v437_v48 = vrot.slane %v389_v44, 1  ;;  %v856_v50 = vrot.slane %v2405_v40, 1  ;;  %v393_v51 = vld [vmem:[%s2323_s10 + $0xa8] sm:$0x1]  ;;  %1602 = vmatprep.mubr.msk.f32.mxu0 %vm449_vm2, %v852_v41  ;;  %v855_v52 = vsel %vm423_vm1, %v853_v42, %v854_v43  ;;  %v2427_v56 = vld [vmem:[%s2323_s10 + $0xb0] sm:$0xff]  ;;  %v396_v61 = vld [vmem:[%s2323_s10 + $0xc0] sm:$0xff]  ;;  %1583 = vmatprep.subr.mxu1 %v698_v17 }
  0xc9   : > { %v857_v53 = vrot.slane %v391_v49, 1  ;;  %v439_v54 = vrot.slane %v2413_v46, 1  ;;  %v440_v55 = vrot.slane %v393_v51, 1  ;;  %v395_v57 = vld [vmem:[%s2323_s10 + $0xb8] sm:$0x1]  ;;  %1561 = vmatmul.mubr.msk.f32.gmra.mrb[2].mxu1 %vm449_vm2, %v2418_v47  ;;  %v859_v59 = vrot.slane %v2427_v56, 1 }
  0xca   : > { %v2433_v58 = vsel %vm423_vm1, %v436_v45, %v437_v48  ;;  %v860_v60 = vrot.slane %v395_v57, 1  ;;  %v397_v62 = vld [vmem:[%s2323_s10 + $0xc8] sm:$0x1]  ;;  %v2439_v63 = vld [vmem:[%s2323_s10 + $0xd0] sm:$0xff]  ;;  %1603 = vmatmul.mubr.msk.f32.gmra.mrb[2].mxu0 %vm449_vm2, %v855_v52  ;;  %v442_v3 = vrot.slane %v396_v61, 1  ;;  %v400_v7 = vld [vmem:[%s2323_s10 + $0xe0] sm:$0xff] }
  0xcb   : > { %1563 = vmatprep.mubr.msk.f32.mxu1 %vm449_vm2, %v2433_v58  ;;  %v858_v0 = vsel %vm423_vm1, %v856_v50, %v857_v53  ;;  %v441_v1 = vsel %vm423_vm1, %v439_v54, %v440_v55  ;;  %v443_v4 = vrot.slane %v397_v62, 1  ;;  %v399_v5 = vld [vmem:[%s2323_s10 + $0xd8] sm:$0x1]  ;;  %v2449_v8 = vld [vmem:[%s2323_s10 + $0xf0] sm:$0xff]  ;;  %v862_v10 = vrot.slane %v2439_v63, 1  ;;  %s1442_s24 = sshll.u32 %s2319_s12, 6 }
  0xcc   : > { %1605 = vmatprep.mubr.msk.f32.mxu0 %vm449_vm2, %v858_v0  ;;  %v861_v9 = vsel %vm423_vm1, %v859_v59, %v860_v60  ;;  %v863_v12 = vrot.slane %v399_v5, 1  ;;  %v401_v13 = vld [vmem:[%s2323_s10 + $0xe8] sm:$0x1]  ;;  %v445_v14 = vrot.slane %v400_v7, 1  ;;  %v403_v20 = vld [vmem:[%s2323_s10 + $0xf8] sm:$0x1] }
  0xcd   : > { %v444_v18 = vsel %vm423_vm1, %v442_v3, %v443_v4  ;;  %v446_v19 = vrot.slane %v401_v13, 1  ;;  %v865_v21 = vrot.slane %v2449_v8, 1  ;;  %v1125_v22 = vld [vmem:[#allocation8 + $0x8] sm:$0xf]  ;;  %1564 = vmatmul.mubr.msk.f32.gmra.mrb[4].mxu1 %vm449_vm2, %v441_v1  ;;  %v866_v24 = vrot.slane %v403_v20, 1  ;;  %s2528_s26 = scalar_lea.vmem [#allocation11], %s1442_s24 }
  0xce   : > { %v864_v23 = vsel %vm423_vm1, %v862_v10, %v863_v12  ;;  %1625 = vmatprep.subr.msk.mxu0 %vm466_vm0, %v1125_v22  ;;  %1606 = vmatmul.mubr.msk.f32.gmra.mrb[4].mxu0 %vm449_vm2, %v861_v9  ;;  %vm575_vm3 = vcmask 64512   ;;  %v1494_v29 = vld [vmem:[#allocation10] ss:$0 sm:$0xff]  ;;  %s1500_s14 = sshll.u32 %s2015_s21, 10  ;;  %s1283_s15 = sshll.u32 %s2528_s26, 4  ;;  %s2549_s15 = int_to_ptr.vmem [resolvable:$true] %s1283_s15 }
  0xcf   : > { %1566 = vmatprep.mubr.msk.f32.mxu1 %vm449_vm2, %v444_v18  ;;  %v447_v25 = vsel %vm423_vm1, %v445_v14, %v446_v19  ;;  %1608 = vmatprep.mubr.msk.f32.mxu0 %vm449_vm2, %v864_v23  ;;  %v867_v27 = vsel %vm423_vm1, %v865_v21, %v866_v24  ;;  %s2547_s16 = scalar_lea.hbm %s2607_s5, %s1500_s14  ;;  %s1268_s21 = scalar_lea.sflag [#allocation4], %s2319_s12 }
  0xd0   : > { %s1929_s7 = scalar_lea.vmem %s2549_s15, 1024  ;;  %s2034_s9 = smov [#allocation11]  }
  0xd1   : > { %1567 = vmatmul.mubr.msk.f32.gmra.mrb[6].mxu1 %vm449_vm2, %v447_v25  ;;  %p1930_p4 = scmp.ne.s32.totalorder %s2549_s15, %s1929_s7  ;;  %s1933_s0 = sshll.u32 %s2034_s9, 4  ;;  %s1934_s0 = int_to_ptr.vmem [resolvable:$false] %s1933_s0 }
  0xd2   : > { %1609 = vmatmul.mubr.msk.f32.gmra.mrb[6].mxu0 %vm449_vm2, %v867_v27  ;;  %1571 = vmatprep.mubr.msk.f32.mxu1 %vm575_vm3, %v2346_v2  ;;  %v404_v2 = vld [vmem:[%s2331_s17] sm:$0xff]  ;;  %s1935_s4 = scalar_lea.vmem %s1934_s0, 2048  ;;  %p1936_p13 = scmp.lt.s32.totalorder %s2549_s15, %s1934_s0 }
  0xd3   : > { %1613 = vmatprep.mubr.msk.f32.mxu0 %vm575_vm3, %v2360_v11  ;;  %p1931_p8 = pnand %p1930_p4, %p2216_p3  ;;  %p1937_p10 = scmp.lt.s32.totalorder %s1935_s4, %s1929_s7 }
  0xd5   : > { %1572 = vmatmul.mubr.msk.f32.vlgmr.msra.gmra.mrb[0].mxu1 %vm575_vm3, %v2360_v11  ;;  %v405_v11 = vld [vmem:[%s2331_s17 + $0x8] sm:$0x1]  ;;  %p1932_p1 = pneg %p1931_p8  ;;  %p1938_p5 = por %p1937_p10, %p1936_p13 }
  0xd6   : > { %1584 = vmatpush3.msra.mxu1 %v698_v17  ;;  %1614 = vmatmul.mubr.msk.f32.vlgmr.msra.gmra.mrb[0].mxu0 %vm575_vm3, %v2368_v16 }
  0xd7   : > { %1626 = vmatpush3.msk.msra.mxu0 %vm466_vm0, %v1125_v22  ;;  %1574 = vmatprep.mubr.msk.f32.mxu1 %vm575_vm3, %v2368_v16  ;;  %p1939_p7 = pnand %p1938_p5, %p1932_p1 }
  0xd8   : > { %1616 = vmatprep.mubr.msk.f32.mxu0 %vm575_vm3, %v2387_v31 }
  0xd9   : > { %1575 = vmatmul.mubr.msk.f32.gmra.mrb[2].mxu1 %vm575_vm3, %v2387_v31 }
  0xda   : > { %1617 = vmatmul.mubr.msk.f32.gmra.mrb[2].mxu0 %vm575_vm3, %v2402_v39  ;;  %1577 = vmatprep.mubr.msk.f32.mxu1 %vm575_vm3, %v2402_v39 }
  0xdb   : > { %1619 = vmatprep.mubr.msk.f32.mxu0 %vm575_vm3, %v2413_v46 }
  0xdd   : > { %1578 = vmatmul.mubr.msk.f32.gmra.mrb[4].mxu1 %vm575_vm3, %v2413_v46 }
  0xde   : > { %1620 = vmatmul.mubr.msk.f32.gmra.mrb[4].mxu0 %vm575_vm3, %v396_v61  ;;  %1580 = vmatprep.mubr.msk.f32.mxu1 %vm575_vm3, %v396_v61 }
  0xdf   : > { %1622 = vmatprep.mubr.msk.f32.mxu0 %vm575_vm3, %v400_v7 }
  0xe1   : > { %1581 = vmatmul.mubr.msk.f32.gmra.mrb[6].mxu1 %vm575_vm3, %v400_v7 }
  0xe2   : > { %1623 = vmatmul.mubr.msk.f32.gmra.mrb[6].mxu0 %vm575_vm3, %v404_v2  ;;  %1585 = vmatprep.mubr.msk.f32.mxu1 %vm575_vm3, %v2353_v6  ;;  %v1121_v6 = vrot.slane %v404_v2, 1 }
  0xe3   : > { %1627 = vmatprep.mubr.msk.f32.mxu0 %vm449_vm2, %v2383_v28 }
  0xe5   : > { %1586 = vmatmul.mubr.msk.f32.vlgmr.msra.gmra.mrb[0].mxu1 %vm575_vm3, %v2365_v15  ;;  %v1122_v15 = vrot.slane %v405_v11, 1 }
  0xe6   : > { %1628 = vmatmul.mubr.msk.f32.vlgmr.msra.gmra.mrb[0].mxu0 %vm449_vm2, %v2397_v35  ;;  %1588 = vmatprep.mubr.msk.f32.mxu1 %vm575_vm3, %v2378_v26 }
  0xe7   : > { %1630 = vmatprep.mubr.msk.f32.mxu0 %vm449_vm2, %v2418_v47  ;;  %v1123_v16 = vsel %vm423_vm1, %v1121_v6, %v1122_v15 }
  0xe9   : > { %1589 = vmatmul.mubr.msk.f32.gmra.mrb[2].mxu1 %vm575_vm3, %v2391_v33 }
  0xea   : > { %1631 = vmatmul.mubr.msk.f32.gmra.mrb[2].mxu0 %vm449_vm2, %v2433_v58  ;;  %1591 = vmatprep.mubr.msk.f32.mxu1 %vm575_vm3, %v2405_v40 }
  0xeb   : > { %1633 = vmatprep.mubr.msk.f32.mxu0 %vm449_vm2, %v441_v1 }
  0xed   : > { %1592 = vmatmul.mubr.msk.f32.gmra.mrb[4].mxu1 %vm575_vm3, %v2427_v56 }
  0xee   : > { %1634 = vmatmul.mubr.msk.f32.gmra.mrb[4].mxu0 %vm449_vm2, %v444_v18  ;;  %1594 = vmatprep.mubr.msk.f32.mxu1 %vm575_vm3, %v2439_v63 }
  0xef   : > { %1636 = vmatprep.mubr.msk.f32.mxu0 %vm449_vm2, %v447_v25 }
  0xf1   : > { %1595 = vmatmul.mubr.msk.f32.gmra.mrb[6].mxu1 %vm575_vm3, %v2449_v8 }
  0xf2   : > { %1637 = vmatmul.mubr.msk.f32.gmra.mrb[6].mxu0 %vm449_vm2, %v1123_v16 }
 0x1b8   : > { %v1587_v26 = vpop.f32.mrb[0].mxu1 }
 0x1b9   : > { %v1629_v28 = vpop.f32.mrb[0].mxu0  ;;  %v789_v30 = vpop.f32.mrb[1].mxu1 }
 0x1ba   : > { %v1639_v31 = vadd.f32 %v1629_v28, %v1587_v26  ;;  %v1197_v32 = vpop.f32.mrb[1].mxu0 }
 0x1bb   : > { %v1640_v33 = vadd.f32 %v1197_v32, %v789_v30 }
 0x1bc   : > { %v1252_v34 = vadd.f32 %v1639_v31, %v1494_v29  ;;  %v1590_v35 = vpop.f32.mrb[2].mxu1 }
 0x1bd   : > { %v1251_v36 = vadd.f32 %v1640_v33, %v1494_v29  ;;  %v1632_v37 = vpop.f32.mrb[2].mxu0  ;;  %v799_v38 = vpop.f32.mrb[3].mxu1 }
 0x1be   : > { %1260 = vst.msk [vmem:[%s2528_s26 + $0x8] sm:$0xff] %vm449_vm2, %v1252_v34  ;;  %v1641_v39 = vadd.f32 %v1632_v37, %v1590_v35  ;;  %v1207_v40 = vpop.f32.mrb[3].mxu0 }
 0x1bf   : > { %1259 = vst.msk [vmem:[%s2528_s26] sm:$0xff] %vm449_vm2, %v1251_v36  ;;  %v1642_v41 = vadd.f32 %v1207_v40, %v799_v38 }
 0x1c0   : > { %v1254_v42 = vadd.f32 %v1641_v39, %v1494_v29  ;;  %v1593_v43 = vpop.f32.mrb[4].mxu1 }
 0x1c1   : > { %v1253_v44 = vadd.f32 %v1642_v41, %v1494_v29  ;;  %v1635_v45 = vpop.f32.mrb[4].mxu0  ;;  %v809_v46 = vpop.f32.mrb[5].mxu1 }
 0x1c2   : > { %1262 = vst.msk [vmem:[%s2528_s26 + $0x18] sm:$0xff] %vm449_vm2, %v1254_v42  ;;  %v1643_v47 = vadd.f32 %v1635_v45, %v1593_v43  ;;  %v1217_v48 = vpop.f32.mrb[5].mxu0 }
 0x1c3   : > { %1261 = vst.msk [vmem:[%s2528_s26 + $0x10] sm:$0xff] %vm449_vm2, %v1253_v44  ;;  %v1644_v49 = vadd.f32 %v1217_v48, %v809_v46 }
 0x1c4   : > { %v1256_v50 = vadd.f32 %v1643_v47, %v1494_v29  ;;  %v1596_v51 = vpop.f32.mrb[6].mxu1 }
 0x1c5   : > { %v1255_v52 = vadd.f32 %v1644_v49, %v1494_v29  ;;  %v1638_v53 = vpop.f32.mrb[6].mxu0  ;;  %v819_v54 = vpop.f32.mrb[7].mxu1 }
 0x1c6   : > { %1264 = vst.msk [vmem:[%s2528_s26 + $0x28] sm:$0xff] %vm449_vm2, %v1256_v50  ;;  %v1645_v55 = vadd.f32 %v1638_v53, %v1596_v51  ;;  %v1227_v56 = vpop.f32.mrb[7].mxu0 }
 0x1c7   : > { %1263 = vst.msk [vmem:[%s2528_s26 + $0x20] sm:$0xff] %vm449_vm2, %v1255_v52  ;;  %v1646_v57 = vadd.f32 %v1227_v56, %v819_v54 }
 0x1c8   : > { %v1258_v58 = vadd.f32 %v1645_v55, %v1494_v29 }
 0x1c9   : > { %v1257_v59 = vadd.f32 %v1646_v57, %v1494_v29 }
 0x1ca   : > { %1266 = vst.msk [vmem:[%s2528_s26 + $0x38] sm:$0xff] %vm449_vm2, %v1258_v58 }
 0x1cb   : > { %1265 = vst.msk [vmem:[%s2528_s26 + $0x30] sm:$0xff] %vm449_vm2, %v1257_v59 }
 0x1cc   : > { %1942 = shalt.err (!%p1939_p7)
}
 0x1cd   : > { %s1943_s8 = scalar_lea.hbm %s2547_s16, 1024  ;;  %s1947_s11 = scalar_lea.hbm %s2607_s5, 2048 }
 0x1ce   : > { %p1944_p12 = scmp.ne.s32.totalorder %s2547_s16, %s1943_s8  ;;  %p1948_p9 = scmp.lt.u32.totalorder %s2547_s16, %s2607_s5 }
 0x1cf   : > { %p1949_p0 = scmp.lt.u32.totalorder %s1947_s11, %s1943_s8  ;;  %p1951_p4 = scmp.lt.u32.totalorder %s1943_s8, %s2547_s16 }
 0x1d0   : > { %p1945_p6 = pnand %p1944_p12, %p2216_p3 }
 0x1d1   : > { %p1950_p2 = por %p1949_p0, %p1948_p9 }
 0x1d2   : > { %p1946_p11 = pneg %p1945_p6 }
 0x1d3   : > { %p1952_p8 = por %p1951_p4, %p1950_p2 }
 0x1d5   : > { %p1953_p1 = pnand %p1952_p8, %p1946_p11 }
 0x1d7   : > { %1956 = shalt.err (!%p1953_p1)
}
 0x1d8   : > { %s2035_s28 = smov 128   ;;  %s2036_s2 = smov 8  }
 0x1d9   : > { %1696 = dma.vmem_to_hbm [thread:$0]  (%p2216_p3), %s2549_s15, 1024, %s2547_s16, %s1268_s21, %s2035_s28, %s2035_s28, %s2036_s2  }
 0x1da PF: > { %s1298_s17 = sand.u32 1, %s2003_s18   ;;  %p2643_p13 = scmp.ne.s32.totalorder %s2621_s27, 0 }
 0x1db   : > { %p2644_p10 = scmp.ge.s32.totalorder %s2023_s23, 2  ;;  %s1299_s24 = scalar_lea.sflag [#allocation4], %s1298_s17 }
 0x1dd   : > { %p1716_p5 = pnand %p2644_p10, %p2643_p13 }
 0x1df   : > { %1998 = dma.done.wait (!%p1716_p5), %s1299_s24, 1024  }
 0x1e0   : > { %2000 = vsyncadd (!%p1716_p5), %s1299_s24, 4294966272  ;;  %s25_s23 = sadd.s32 1, %s2023_s23   ;;  %s2645_s26 = sld [smem:[#allocation18_spill]] }
 0x1e1   : > { %p22_p7 = scmp.ge.s32.totalorder %s25_s23, 4   ;;  %s2646_s6 = sld [smem:[#allocation17_spill]] }
 0x1e2   : > { %s2647_s18 = smov %s2007_s19  ;;  %s2648_s19 = smov %s2011_s20 }
 0x1e3   : > { %s2650_s21 = smov %s2019_s22  ;;  %24 = sbr.rel (!%p22_p7) target bundleno = 14 (0xe), region = 114 }
 0x1e6   : > { %s2649_s20 = smov %s2645_s26 }
 0x1e7   : > { %s2651_s22 = smov %s2646_s6 }
 0x1ea   :  { %1304 = vsyncpa [#allocation3], 1 }
 0x1eb   :  { %1306 = vsyncpa [#allocation3 + $0x1], 1 }
 0x1ec   :  { %1307 = vsyncpa [#allocation6], 1 }
 0x1ed   :  { %1309 = vsyncpa [#allocation6 + $0x1], 1 }
 0x1ee   :  { %1310 = vsyncpa [#allocation9], 1 }
 0x1ef   :  { %1311 = vsyncpa [#allocation4], 1 }
 0x1f0   :  { %1313 = vsyncpa [#allocation4 + $0x1], 1 }

</bundles_post_ra>
